<compile_context>
chip_gen: v7x
topology: tpu7x:2x2x1
jax: 0.10.0
libtpu: 0.0.40
codegen_flags: <defaults>
</compile_context>

<pallas_src>
import functools

import jax
import jax.numpy as jnp
from jax.experimental import pallas as pl
from jax.experimental.pallas import tpu as pltpu


def _round_up(x, m):
    return (x + m - 1) // m * m


def _node_apply_kernel(x_ref, w_ref, b_ref, o_ref, acc_ref):
    # x_ref: (TN, TK)  node-feature tile
    # w_ref: (TK, TF)  weight tile (already transposed to [in, out])
    # b_ref: (1, TF)   bias tile
    # o_ref: (TN, TF)  output tile (resident across the K axis)
    # acc_ref: (TN, TF) f32 accumulator scratch
    k = pl.program_id(2)

    @pl.when(k == 0)
    def _():
        acc_ref[...] = jnp.zeros_like(acc_ref)

    acc_ref[...] += jnp.dot(
        x_ref[...], w_ref[...], preferred_element_type=jnp.float32
    )

    @pl.when(k == pl.num_programs(2) - 1)
    def _():
        h = acc_ref[...] + b_ref[...].astype(jnp.float32)   # bias add in f32
        o_ref[...] = jnp.maximum(h, 0.0).astype(o_ref.dtype)  # activation = ReLU


def prepare_linear_params(weight, bias, *, tile_k=512, tile_f=1024):
    """One-time (model-init) prep: transpose W to [in, out] and zero-pad the
    feature dims to tile multiples (>=128) for lane-dense kernel access.

    weight: [out_feats, in_feats] (PyTorch nn.Linear layout); bias: [out_feats].
    Returns (w_t_pad [K_pad, F_pad], b_pad [1, F_pad], tile_k, tile_f).
    """
    out_feats, in_feats = weight.shape
    tk = min(tile_k, _round_up(in_feats, 128))
    tf = min(tile_f, _round_up(out_feats, 128))
    k_pad = _round_up(in_feats, tk)
    f_pad = _round_up(out_feats, tf)
    w_t_pad = jnp.zeros((k_pad, f_pad), weight.dtype)
    w_t_pad = w_t_pad.at[:in_feats, :out_feats].set(weight.T)
    b_pad = jnp.zeros((1, f_pad), bias.dtype)
    b_pad = b_pad.at[0, :out_feats].set(bias)
    return w_t_pad, b_pad, tk, tf


@functools.partial(
    jax.jit, static_argnames=("out_feats", "tile_n", "tile_k", "tile_f")
)
def node_apply(x, w_t_pad, b_pad, *, out_feats, tile_n=512, tile_k, tile_f):
    """x: [N, in_feats]; w_t_pad/b_pad from prepare_linear_params.
    Returns relu(x @ W.T + b) with shape [N, out_feats]."""
    n, in_feats = x.shape
    k_pad, f_pad = w_t_pad.shape

    # Ragged node count: clamp the tile to the (8-aligned) node count and
    # zero-pad rows up to a tile multiple — no divisibility assert.
    tn = min(tile_n, _round_up(n, 8))
    n_pad = _round_up(n, tn)

    x_pad = jnp.zeros((n_pad, k_pad), x.dtype)
    x_pad = x_pad.at[:n, :in_feats].set(x)

    grid = (n_pad // tn, f_pad // tile_f, k_pad // tile_k)

    out_pad = pl.pallas_call(
        _node_apply_kernel,
        out_shape=jax.ShapeDtypeStruct((n_pad, f_pad), x.dtype),
        grid_spec=pltpu.PrefetchScalarGridSpec(
            num_scalar_prefetch=0,
            grid=grid,
            in_specs=[
                pl.BlockSpec((tn, tile_k), lambda i, j, k: (i, k)),
                pl.BlockSpec((tile_k, tile_f), lambda i, j, k: (k, j)),
                pl.BlockSpec((1, tile_f), lambda i, j, k: (0, j)),
            ],
            out_specs=pl.BlockSpec((tn, tile_f), lambda i, j, k: (i, j)),
            scratch_shapes=[pltpu.VMEM((tn, tile_f), jnp.float32)],
        ),
        compiler_params=pltpu.CompilerParams(
            dimension_semantics=("parallel", "parallel", "arbitrary"),
            vmem_limit_bytes=64 * 1024 * 1024,
        ),
    )(x_pad, w_t_pad, b_pad)

    return out_pad[:n, :out_feats]


def node_apply_reference(x, weight, bias):
    # Pure-JAX reference matching PyTorch: relu(x @ W.T + b)
    return jnp.maximum(x @ weight.T + bias, 0.0)


if __name__ == "__main__":
    key = jax.random.PRNGKey(0)
    k_x, k_w, k_b = jax.random.split(key, 3)

    # Small, deliberately "awkward" shapes: N not a tile multiple,
    # feature dims not multiples of 128 — exercises padding + ragged-tail path.
    N = 200          # number of graph nodes
    in_feats = 48
    out_feats = 32

    x = jax.random.normal(k_x, (N, in_feats), dtype=jnp.float32)

    # Deterministic "Linear" parameter init (PyTorch-like uniform bound 1/sqrt(in_feats))
    bound = 1.0 / (in_feats ** 0.5)
    weight = jax.random.uniform(
        k_w, (out_feats, in_feats), minval=-bound, maxval=bound, dtype=jnp.float32
    )
    bias = jax.random.uniform(
        k_b, (out_feats,), minval=-bound, maxval=bound, dtype=jnp.float32
    )

    # One-time weight prep (would live at module init in a real model).
    # For bf16 deployments on v6e/v7x, cast x/weight to bfloat16 here — the
    # kernel still accumulates in f32.
    w_t_pad, b_pad, tile_k, tile_f = prepare_linear_params(weight, bias)

    out = node_apply(
        x, w_t_pad, b_pad,
        out_feats=out_feats, tile_n=512, tile_k=tile_k, tile_f=tile_f,
    )
    out = jax.block_until_ready(out)

    ref = node_apply_reference(x, weight, bias)
    assert out.shape == (N, out_feats)
    assert jnp.allclose(out, ref, atol=1e-5, rtol=1e-5), "mismatch vs reference"

    print("KERNEL_OK")
</pallas_src>

<mosaic_0001>
module attributes {stable_mosaic.version = 11 : i64} {
  func.func @_node_apply_kernel(%arg0: i32, %arg1: i32, %arg2: i32, %arg3: memref<200x128xf32, #tpu.memory_space<vmem>>, %arg4: memref<128x128xf32, #tpu.memory_space<vmem>>, %arg5: memref<1x128xf32, #tpu.memory_space<vmem>>, %arg6: memref<200x128xf32, #tpu.memory_space<vmem>>, %arg7: memref<200x128xf32, #tpu.memory_space<vmem>>) attributes {dimension_semantics = [#tpu.dimension_semantics<parallel>, #tpu.dimension_semantics<parallel>, #tpu.dimension_semantics<arbitrary>], iteration_bounds = array<i64: 1, 1, 1>, scalar_prefetch = 0 : i64, scratch_operands = 1 : i64, tpu.core_type = #tpu.core_type<tc>, window_params = [{transform_indices = @transform_0, window_bounds = array<i64: 200, 128>}, {transform_indices = @transform_1, window_bounds = array<i64: 128, 128>}, {transform_indices = @transform_2, window_bounds = array<i64: 1, 128>}, {transform_indices = @transform_3, window_bounds = array<i64: 200, 128>}]} {
    %c0_i32 = arith.constant 0 : i32
    %0 = arith.cmpi eq, %arg2, %c0_i32 : i32
    %1 = arith.extui %0 : i1 to i32
    %c0_i32_0 = arith.constant 0 : i32
    %2 = arith.cmpi ne, %1, %c0_i32_0 : i32
    scf.if %2 {
      %cst_10 = arith.constant 0.000000e+00 : f32
      %12 = vector.broadcast %cst_10 : f32 to vector<200x128xf32>
      %c0_11 = arith.constant 0 : index
      %c0_12 = arith.constant 0 : index
      %13 = vector.load %arg7[%c0_11, %c0_12] : memref<200x128xf32, #tpu.memory_space<vmem>>, vector<200x128xf32>
      tpu.vector_store %arg7[%c0_11, %c0_12], %12 {strides = array<i32>} : memref<200x128xf32, #tpu.memory_space<vmem>>, vector<200x128xf32>,
    } else {
    }
    %c0 = arith.constant 0 : index
    %c0_1 = arith.constant 0 : index
    %3 = vector.load %arg7[%c0, %c0_1] : memref<200x128xf32, #tpu.memory_space<vmem>>, vector<200x128xf32>
    %c0_2 = arith.constant 0 : index
    %c0_3 = arith.constant 0 : index
    %4 = vector.load %arg3[%c0_2, %c0_3] : memref<200x128xf32, #tpu.memory_space<vmem>>, vector<200x128xf32>
    %c0_4 = arith.constant 0 : index
    %c0_5 = arith.constant 0 : index
    %5 = vector.load %arg4[%c0_4, %c0_5] : memref<128x128xf32, #tpu.memory_space<vmem>>, vector<128x128xf32>
    %cst = arith.constant dense<0.000000e+00> : vector<200x128xf32>
    %6 = tpu.matmul %4, %5, %cst {dimension_numbers = #tpu.dot_dimension_numbers<[1], [0], [0], [1], [0, 0, 1, 1], [], []>} : vector<200x128xf32>, vector<128x128xf32>, vector<200x128xf32> -> vector<200x128xf32>
    %7 = arith.addf %3, %6 : vector<200x128xf32>
    %c0_6 = arith.constant 0 : index
    %c0_7 = arith.constant 0 : index
    %8 = vector.load %arg7[%c0_6, %c0_7] : memref<200x128xf32, #tpu.memory_space<vmem>>, vector<200x128xf32>
    tpu.vector_store %arg7[%c0_6, %c0_7], %7 {strides = array<i32>} : memref<200x128xf32, #tpu.memory_space<vmem>>, vector<200x128xf32>,
    %c0_i32_8 = arith.constant 0 : i32
    %9 = arith.cmpi eq, %arg2, %c0_i32_8 : i32
    %10 = arith.extui %9 : i1 to i32
    %c0_i32_9 = arith.constant 0 : i32
    %11 = arith.cmpi ne, %10, %c0_i32_9 : i32
    scf.if %11 {
      %c0_10 = arith.constant 0 : index
      %c0_11 = arith.constant 0 : index
      %12 = vector.load %arg7[%c0_10, %c0_11] : memref<200x128xf32, #tpu.memory_space<vmem>>, vector<200x128xf32>
      %c0_12 = arith.constant 0 : index
      %c0_13 = arith.constant 0 : index
      %13 = vector.load %arg5[%c0_12, %c0_13] : memref<1x128xf32, #tpu.memory_space<vmem>>, vector<1x128xf32>
      %14 = vector.broadcast %13 : vector<1x128xf32> to vector<200x128xf32>
      %15 = arith.addf %12, %14 : vector<200x128xf32>
      %cst_14 = arith.constant 0.000000e+00 : f32
      %16 = vector.broadcast %cst_14 : f32 to vector<200x128xf32>
      %17 = arith.maximumf %15, %16 : vector<200x128xf32>
      %c0_15 = arith.constant 0 : index
      %c0_16 = arith.constant 0 : index
      %18 = vector.load %arg6[%c0_15, %c0_16] : memref<200x128xf32, #tpu.memory_space<vmem>>, vector<200x128xf32>
      tpu.vector_store %arg6[%c0_15, %c0_16], %17 {strides = array<i32>} : memref<200x128xf32, #tpu.memory_space<vmem>>, vector<200x128xf32>,
    } else {
    }
    return
  }
  func.func @transform_0(%arg0: i32, %arg1: i32, %arg2: i32) -> (i32, i32) {
    %c0_i32 = arith.constant 0 : i32
    return %arg0, %arg2 : i32, i32
  }
  func.func @transform_1(%arg0: i32, %arg1: i32, %arg2: i32) -> (i32, i32) {
    %c0_i32 = arith.constant 0 : i32
    return %arg2, %arg1 : i32, i32
  }
  func.func @transform_2(%arg0: i32, %arg1: i32, %arg2: i32) -> (i32, i32) {
    %c0_i32 = arith.constant 0 : i32
    %c0_i32_0 = arith.constant 0 : i32
    return %c0_i32, %arg1 : i32, i32
  }
  func.func @transform_3(%arg0: i32, %arg1: i32, %arg2: i32) -> (i32, i32) {
    %c0_i32 = arith.constant 0 : i32
    return %arg0, %arg1 : i32, i32
  }
}

</mosaic_0001>

<bundles_post_ra>
// kernel: node_apply.1
= control target key start
LH: loop header
LB: loop body
LE: loop exit
PB: predicated region body
PF: predicated region fallthrough
CT: control target
= control target key end

     0   :  { %8 = vsyncpa [#allocation4], 0  ;;  %s979_s0 = inlined_call_operand.hbm [shape: f32[200,128], index: 0, kind: input, shape index: {}]   ;;  %s980_s1 = inlined_call_operand.hbm [shape: f32[128,128], index: 1, kind: input, shape index: {}]   ;;  %s981_s2 = inlined_call_operand.hbm [shape: f32[1,128], index: 2, kind: input, shape index: {}]   ;;  %s982_s3 = inlined_call_operand.hbm [shape: f32[200,128], index: 3, kind: output, shape index: {}]  }
   0x1   :  { %9 = vsyncpa [#allocation7], 0 }
   0x2   :  { %10 = vsyncpa [#allocation5], 0  ;;  %s809_s12 = smov [#allocation6]   ;;  %s810_s14 = smov [#allocation3]  }
   0x3   :  { %s28_s13 = sshll.u32 %s809_s12, 4  ;;  %s16_s15 = sshll.u32 %s810_s14, 4  ;;  %s29_s13 = int_to_ptr.vmem [resolvable:$true] %s28_s13  ;;  %s838_s15 = int_to_ptr.vmem [resolvable:$true] %s16_s15 }
   0x4   :  { %s715_s18 = scalar_lea.hbm %s980_s1, 2048 }
   0x5   :  { %p716_p0 = scmp.ne.s32.totalorder %s980_s1, %s715_s18  ;;  %p719_p1 = scmp.lt.u32.totalorder %s715_s18, %s980_s1 }
   0x7   :  { %p721_p2 = pnand %p719_p1, %p716_p0 }
   0x9   :  { %724 = shalt.err (!%p721_p2)
}
   0xa   :  { %s725_s23 = scalar_lea.vmem %s29_s13, 2048  ;;  %p730_p4 = scmp.lt.s32.totalorder %s29_s13, %s29_s13 }
   0xb   :  { %p726_p3 = scmp.ne.s32.totalorder %s29_s13, %s725_s23  ;;  %p731_p5 = scmp.lt.s32.totalorder %s725_s23, %s725_s23 }
   0xd   :  { %p732_p6 = por %p731_p5, %p730_p4 }
   0xf   :  { %p733_p7 = pnand %p732_p6, %p726_p3 }
  0x11   :  { %736 = shalt.err (!%p733_p7)
}
  0x12   :  { %s811_s24 = smov 128   ;;  %s812_s25 = smov 8  }
  0x13   :  { %34 = dma.hbm_to_vmem [thread:$0]  %s980_s1, 2048, %s29_s13, [#allocation7], %s811_s24, %s811_s24, %s812_s25  }
  0x14   :  { %s737_s30 = scalar_lea.hbm %s979_s0, 3200 }
  0x15   :  { %p738_p8 = scmp.ne.s32.totalorder %s979_s0, %s737_s30  ;;  %p741_p9 = scmp.lt.u32.totalorder %s737_s30, %s979_s0 }
  0x17   :  { %p743_p10 = pnand %p741_p9, %p738_p8 }
  0x19   :  { %746 = shalt.err (!%p743_p10)
}
  0x1a   :  { %s747_s8 = scalar_lea.vmem %s838_s15, 3200  ;;  %p752_p12 = scmp.lt.s32.totalorder %s838_s15, %s838_s15 }
  0x1b   :  { %p748_p11 = scmp.ne.s32.totalorder %s838_s15, %s747_s8  ;;  %p753_p13 = scmp.lt.s32.totalorder %s747_s8, %s747_s8 }
  0x1d   :  { %p754_p0 = por %p753_p13, %p752_p12 }
  0x1f   :  { %p755_p1 = pnand %p754_p0, %p748_p11 }
  0x21   :  { %758 = shalt.err (!%p755_p1)
}
  0x22   :  { %22 = dma.hbm_to_vmem [thread:$0]  %s979_s0, 3200, %s838_s15, [#allocation4], %s811_s24, %s811_s24, %s812_s25  }
  0x23   :  { %s813_s10 = smov [#allocation8]   ;;  %s759_s14 = scalar_lea.hbm %s981_s2, 16 }
  0x24   :  { %s41_s11 = sshll.u32 %s813_s10, 4  ;;  %p760_p2 = scmp.ne.s32.totalorder %s981_s2, %s759_s14  ;;  %s42_s11 = int_to_ptr.vmem [resolvable:$true] %s41_s11 }
  0x25   :  { %p763_p3 = scmp.lt.u32.totalorder %s759_s14, %s981_s2 }
  0x27   :  { %p765_p4 = pnand %p763_p3, %p760_p2 }
  0x29   :  { %768 = shalt.err (!%p765_p4)
}
  0x2a   :  { %s769_s20 = scalar_lea.vmem %s42_s11, 16  ;;  %s773_s0 = scalar_lea.vmem %s42_s11, 32 }
  0x2b   :  { %p770_p5 = scmp.ne.s32.totalorder %s42_s11, %s769_s20  ;;  %p774_p6 = scmp.lt.s32.totalorder %s42_s11, %s42_s11 }
  0x2c   :  { %p775_p7 = scmp.lt.s32.totalorder %s773_s0, %s769_s20 }
  0x2e   :  { %p776_p8 = por %p775_p7, %p774_p6 }
  0x30   :  { %p777_p9 = pnand %p776_p8, %p770_p5 }
  0x32   :  { %780 = shalt.err (!%p777_p9)
}
  0x33   :  { %44 = dma.hbm_to_vmem [thread:$0]  %s981_s2, 16, %s42_s11, [#allocation7]  }
  0x34   :  { %803 = dma.done.wait [#allocation4], 3200  }
  0x35   :  { %804 = vsyncadd [#allocation4], 4294964096 }
  0x36   :  { %805 = dma.done.wait [#allocation7], 2064  }
  0x37   :  { %806 = vsyncadd [#allocation7], 4294965232  ;;  %v814_v0 = vmov 0.0|0.0   ;;  %vm815_vm0 = vmmov 0   ;;  %v816_v1 = vmov 0.0   ;;  %v133_v2 = vld [vmem:[#allocation6] sm:$0xff] }
  0x38   :  { %666 = vmatprep.subr.bf16.mxu0 %v814_v0  ;;  %690 = vmatprep.subr.bf16.mxu1 %v814_v0  ;;  %v134_v3 = vld [vmem:[#allocation6 + $0x8] sm:$0xff]  ;;  %v135_v4 = vld [vmem:[#allocation6 + $0x10] sm:$0xff]  ;;  %v136_v6 = vld [vmem:[#allocation6 + $0x18] sm:$0xff]  ;;  %s817_s2 = smov [#allocation9]  }
  0x39   :  { %591 = vmatprep.mubr.msk.f32.mxu0 %vm815_vm0, %v816_v1  ;;  %630 = vmatprep.mubr.msk.f32.mxu1 %vm815_vm0, %v816_v1  ;;  %v667_v5 = vpack.c.bf16 %v134_v3, %v133_v2  ;;  %v670_v7 = vpack.c.bf16 %v136_v6, %v135_v4  ;;  %v137_v8 = vld [vmem:[#allocation6 + $0x20] sm:$0xff]  ;;  %v138_v9 = vld [vmem:[#allocation6 + $0x28] sm:$0xff]  ;;  %v139_v11 = vld [vmem:[#allocation6 + $0x30] sm:$0xff]  ;;  %s504_s22 = sshll.u32 %s817_s2, 4  ;;  %s505_s22 = int_to_ptr.vmem [resolvable:$true] %s504_s22 }
  0x3a   :  { %v673_v10 = vpack.c.bf16 %v138_v9, %v137_v8  ;;  %v140_v12 = vld [vmem:[#allocation6 + $0x38] sm:$0xff]  ;;  %v141_v14 = vld [vmem:[#allocation6 + $0x40] sm:$0xff]  ;;  %v142_v15 = vld [vmem:[#allocation6 + $0x48] sm:$0xff]  ;;  %s781_s23 = scalar_lea.vmem %s505_s22, 3200  ;;  %p786_p11 = scmp.lt.s32.totalorder %s505_s22, %s505_s22 }
  0x3b   :  { %668 = vmatpush3.bf16.msra.mxu0 %v667_v5  ;;  %698 = vmatpush3.bf16.msra.mxu1 %v667_v5  ;;  %v676_v13 = vpack.c.bf16 %v140_v12, %v139_v11  ;;  %v679_v16 = vpack.c.bf16 %v142_v15, %v141_v14  ;;  %v143_v17 = vld [vmem:[#allocation6 + $0x50] sm:$0xff]  ;;  %v144_v18 = vld [vmem:[#allocation6 + $0x58] sm:$0xff]  ;;  %v145_v20 = vld [vmem:[#allocation6 + $0x60] sm:$0xff]  ;;  %p782_p10 = scmp.ne.s32.totalorder %s505_s22, %s781_s23  ;;  %p787_p12 = scmp.lt.s32.totalorder %s781_s23, %s781_s23 }
  0x3c   :  { %669 = vmatprep.subr.bf16.mxu0 %v814_v0  ;;  %691 = vmatprep.subr.bf16.mxu1 %v814_v0  ;;  %v682_v19 = vpack.c.bf16 %v144_v18, %v143_v17  ;;  %v146_v21 = vld [vmem:[#allocation6 + $0x68] sm:$0xff]  ;;  %v147_v23 = vld [vmem:[#allocation6 + $0x70] sm:$0xff]  ;;  %v148_v24 = vld [vmem:[#allocation6 + $0x78] sm:$0xff] }
  0x3d   :  { %v685_v22 = vpack.c.bf16 %v146_v21, %v145_v20  ;;  %v688_v25 = vpack.c.bf16 %v148_v24, %v147_v23  ;;  %v108_v26 = vld [vmem:[#allocation3] sm:$0xff]  ;;  %v121_v27 = vld [vmem:[#allocation3 + $0x68] sm:$0xff]  ;;  %v122_v29 = vld [vmem:[#allocation3 + $0x70] sm:$0xff]  ;;  %p788_p13 = por %p787_p12, %p786_p11 }
  0x3e   :  { %v109_v28 = vld [vmem:[#allocation3 + $0x8] sm:$0xff]  ;;  %v110_v30 = vld [vmem:[#allocation3 + $0x10] sm:$0xff]  ;;  %v123_v31 = vld [vmem:[#allocation3 + $0x78] sm:$0xff] }
  0x3f   :  { %671 = vmatpush3.bf16.msra.mxu0 %v670_v7  ;;  %699 = vmatpush3.bf16.msra.mxu1 %v670_v7  ;;  %v111_v32 = vld [vmem:[#allocation3 + $0x18] sm:$0xff]  ;;  %v124_v33 = vld [vmem:[#allocation3 + $0x80] sm:$0xff]  ;;  %v125_v35 = vld [vmem:[#allocation3 + $0x88] sm:$0xff]  ;;  %p789_p0 = pnand %p788_p13, %p782_p10 }
  0x40   :  { %672 = vmatprep.subr.bf16.mxu0 %v814_v0  ;;  %692 = vmatprep.subr.bf16.mxu1 %v814_v0  ;;  %v112_v34 = vld [vmem:[#allocation3 + $0x20] sm:$0xff]  ;;  %v113_v36 = vld [vmem:[#allocation3 + $0x28] sm:$0xff]  ;;  %v126_v37 = vld [vmem:[#allocation3 + $0x90] sm:$0xff] }
  0x41   :  { %v114_v38 = vld [vmem:[#allocation3 + $0x30] sm:$0xff]  ;;  %v127_v39 = vld [vmem:[#allocation3 + $0x98] sm:$0xff]  ;;  %v128_v41 = vld [vmem:[#allocation3 + $0xa0] sm:$0xff] }
  0x42   :  { %v115_v40 = vld [vmem:[#allocation3 + $0x38] sm:$0xff]  ;;  %v116_v42 = vld [vmem:[#allocation3 + $0x40] sm:$0xff]  ;;  %v129_v43 = vld [vmem:[#allocation3 + $0xa8] sm:$0xff] }
  0x43   :  { %674 = vmatpush3.bf16.msra.mxu0 %v673_v10  ;;  %700 = vmatpush3.bf16.msra.mxu1 %v673_v10  ;;  %v117_v44 = vld [vmem:[#allocation3 + $0x48] sm:$0xff]  ;;  %v130_v45 = vld [vmem:[#allocation3 + $0xb0] sm:$0xff]  ;;  %v131_v47 = vld [vmem:[#allocation3 + $0xb8] sm:$0xff] }
  0x44   :  { %675 = vmatprep.subr.bf16.mxu0 %v814_v0  ;;  %693 = vmatprep.subr.bf16.mxu1 %v814_v0  ;;  %v118_v46 = vld [vmem:[#allocation3 + $0x50] sm:$0xff]  ;;  %v119_v48 = vld [vmem:[#allocation3 + $0x58] sm:$0xff]  ;;  %v132_v49 = vld [vmem:[#allocation3 + $0xc0] sm:$0xff] }
  0x45   :  { %v120_v50 = vld [vmem:[#allocation3 + $0x60] sm:$0xff]  ;;  %v937_v51 = vld [vmem:[#allocation8] ss:$0 sm:$0xff] }
  0x47   :  { %677 = vmatpush3.bf16.msra.mxu0 %v676_v13  ;;  %701 = vmatpush3.bf16.msra.mxu1 %v676_v13 }
  0x48   :  { %678 = vmatprep.subr.bf16.mxu0 %v814_v0  ;;  %694 = vmatprep.subr.bf16.mxu1 %v814_v0 }
  0x4b   :  { %680 = vmatpush3.bf16.msra.mxu0 %v679_v16  ;;  %702 = vmatpush3.bf16.msra.mxu1 %v679_v16 }
  0x4c   :  { %681 = vmatprep.subr.bf16.mxu0 %v814_v0  ;;  %695 = vmatprep.subr.bf16.mxu1 %v814_v0 }
  0x4f   :  { %683 = vmatpush3.bf16.msra.mxu0 %v682_v19  ;;  %703 = vmatpush3.bf16.msra.mxu1 %v682_v19 }
  0x50   :  { %684 = vmatprep.subr.bf16.mxu0 %v814_v0  ;;  %696 = vmatprep.subr.bf16.mxu1 %v814_v0 }
  0x53   :  { %686 = vmatpush3.bf16.msra.mxu0 %v685_v22  ;;  %704 = vmatpush3.bf16.msra.mxu1 %v685_v22 }
  0x54   :  { %687 = vmatprep.subr.bf16.mxu0 %v814_v0  ;;  %697 = vmatprep.subr.bf16.mxu1 %v814_v0 }
  0x57   :  { %689 = vmatpush3.bf16.msra.mxu0 %v688_v25  ;;  %705 = vmatpush3.bf16.msra.mxu1 %v688_v25 }
  0x5a   :  { %592 = vmatmul.mubr.f32.vlgmr.msra.gmra.mrb[0].mxu0 %v108_v26  ;;  %631 = vmatmul.mubr.f32.vlgmr.msra.gmra.mrb[0].mxu1 %v121_v27 }
  0x5b   :  { %594 = vmatprep.mubr.msk.f32.mxu0 %vm815_vm0, %v816_v1  ;;  %633 = vmatprep.mubr.msk.f32.mxu1 %vm815_vm0, %v816_v1 }
  0x5e   :  { %595 = vmatmul.mubr.f32.gmra.mrb[2].mxu0 %v109_v28  ;;  %634 = vmatmul.mubr.f32.gmra.mrb[2].mxu1 %v122_v29 }
  0x5f   :  { %597 = vmatprep.mubr.msk.f32.mxu0 %vm815_vm0, %v816_v1  ;;  %636 = vmatprep.mubr.msk.f32.mxu1 %vm815_vm0, %v816_v1 }
  0x62   :  { %598 = vmatmul.mubr.f32.gmra.mrb[4].mxu0 %v110_v30  ;;  %637 = vmatmul.mubr.f32.gmra.mrb[4].mxu1 %v123_v31 }
  0x63   :  { %600 = vmatprep.mubr.msk.f32.mxu0 %vm815_vm0, %v816_v1  ;;  %639 = vmatprep.mubr.msk.f32.mxu1 %vm815_vm0, %v816_v1 }
  0x66   :  { %601 = vmatmul.mubr.f32.gmra.mrb[6].mxu0 %v111_v32  ;;  %640 = vmatmul.mubr.f32.gmra.mrb[6].mxu1 %v124_v33 }
  0x67   :  { %603 = vmatprep.mubr.msk.f32.mxu0 %vm815_vm0, %v816_v1  ;;  %642 = vmatprep.mubr.msk.f32.mxu1 %vm815_vm0, %v816_v1 }
  0x6a   :  { %604 = vmatmul.mubr.f32.gmra.mrb[8].mxu0 %v112_v34  ;;  %643 = vmatmul.mubr.f32.gmra.mrb[8].mxu1 %v125_v35 }
  0x6b   :  { %606 = vmatprep.mubr.msk.f32.mxu0 %vm815_vm0, %v816_v1  ;;  %645 = vmatprep.mubr.msk.f32.mxu1 %vm815_vm0, %v816_v1 }
  0x6e   :  { %607 = vmatmul.mubr.f32.gmra.mrb[10].mxu0 %v113_v36  ;;  %646 = vmatmul.mubr.f32.gmra.mrb[10].mxu1 %v126_v37 }
  0x6f   :  { %609 = vmatprep.mubr.msk.f32.mxu0 %vm815_vm0, %v816_v1  ;;  %648 = vmatprep.mubr.msk.f32.mxu1 %vm815_vm0, %v816_v1 }
  0x72   :  { %610 = vmatmul.mubr.f32.gmra.mrb[12].mxu0 %v114_v38  ;;  %649 = vmatmul.mubr.f32.gmra.mrb[12].mxu1 %v127_v39 }
  0x73   :  { %612 = vmatprep.mubr.msk.f32.mxu0 %vm815_vm0, %v816_v1  ;;  %651 = vmatprep.mubr.msk.f32.mxu1 %vm815_vm0, %v816_v1 }
  0x76   :  { %613 = vmatmul.mubr.f32.gmra.mrb[14].mxu0 %v115_v40  ;;  %652 = vmatmul.mubr.f32.gmra.mrb[14].mxu1 %v128_v41 }
  0x77   :  { %615 = vmatprep.mubr.msk.f32.mxu0 %vm815_vm0, %v816_v1  ;;  %654 = vmatprep.mubr.msk.f32.mxu1 %vm815_vm0, %v816_v1 }
  0x7a   :  { %616 = vmatmul.mubr.f32.gmra.mrb[16].mxu0 %v116_v42  ;;  %655 = vmatmul.mubr.f32.gmra.mrb[16].mxu1 %v129_v43 }
  0x7b   :  { %618 = vmatprep.mubr.msk.f32.mxu0 %vm815_vm0, %v816_v1  ;;  %657 = vmatprep.mubr.msk.f32.mxu1 %vm815_vm0, %v816_v1 }
  0x7e   :  { %619 = vmatmul.mubr.f32.gmra.mrb[18].mxu0 %v117_v44  ;;  %658 = vmatmul.mubr.f32.gmra.mrb[18].mxu1 %v130_v45 }
  0x7f   :  { %621 = vmatprep.mubr.msk.f32.mxu0 %vm815_vm0, %v816_v1  ;;  %660 = vmatprep.mubr.msk.f32.mxu1 %vm815_vm0, %v816_v1 }
  0x82   :  { %622 = vmatmul.mubr.f32.gmra.mrb[20].mxu0 %v118_v46  ;;  %661 = vmatmul.mubr.f32.gmra.mrb[20].mxu1 %v131_v47 }
  0x83   :  { %624 = vmatprep.mubr.msk.f32.mxu0 %vm815_vm0, %v816_v1  ;;  %663 = vmatprep.mubr.msk.f32.mxu1 %vm815_vm0, %v816_v1 }
  0x86   :  { %625 = vmatmul.mubr.f32.gmra.mrb[22].mxu0 %v119_v48  ;;  %664 = vmatmul.mubr.f32.gmra.mrb[22].mxu1 %v132_v49 }
  0x87   :  { %627 = vmatprep.mubr.msk.f32.mxu0 %vm815_vm0, %v816_v1 }
  0x8a   :  { %628 = vmatmul.mubr.f32.gmra.mrb[24].mxu0 %v120_v50 }
 0x12d   :  { %v215_v52 = vpop.f32.mrb[0].mxu0  ;;  %v280_v53 = vpop.f32.mrb[0].mxu1 }
 0x12e   :  { %v424_v54 = vadd.f32 %v937_v51, %v215_v52  ;;  %v593_v55 = vpop.f32.mrb[1].mxu0  ;;  %v437_v56 = vadd.f32 %v937_v51, %v280_v53  ;;  %v632_v57 = vpop.f32.mrb[1].mxu1 }
 0x130   :  { %v449_v58 = vmax.f32 %v424_v54, 0.0  ;;  %v462_v59 = vmax.f32 %v437_v56, 0.0 }
 0x131   :  { %v220_v60 = vpop.f32.mrb[2].mxu0  ;;  %v285_v61 = vpop.f32.mrb[2].mxu1 }
 0x132   :  { %474 = vst [vmem:[#allocation9] sm:$0xff] %v449_v58  ;;  %487 = vst [vmem:[#allocation9 + $0x68] sm:$0xff] %v462_v59  ;;  %v425_v62 = vadd.f32 %v937_v51, %v220_v60  ;;  %v596_v63 = vpop.f32.mrb[3].mxu0  ;;  %v438_v0 = vadd.f32 %v937_v51, %v285_v61  ;;  %v635_v1 = vpop.f32.mrb[3].mxu1 }
 0x134   :  { %v450_v2 = vmax.f32 %v425_v62, 0.0  ;;  %v463_v3 = vmax.f32 %v438_v0, 0.0 }
 0x135   :  { %v225_v4 = vpop.f32.mrb[4].mxu0  ;;  %v290_v5 = vpop.f32.mrb[4].mxu1 }
 0x136   :  { %475 = vst [vmem:[#allocation9 + $0x8] sm:$0xff] %v450_v2  ;;  %488 = vst [vmem:[#allocation9 + $0x70] sm:$0xff] %v463_v3  ;;  %v426_v6 = vadd.f32 %v937_v51, %v225_v4  ;;  %v599_v7 = vpop.f32.mrb[5].mxu0  ;;  %v439_v8 = vadd.f32 %v937_v51, %v290_v5  ;;  %v638_v9 = vpop.f32.mrb[5].mxu1 }
 0x138   :  { %v451_v10 = vmax.f32 %v426_v6, 0.0  ;;  %v464_v11 = vmax.f32 %v439_v8, 0.0 }
 0x139   :  { %v230_v12 = vpop.f32.mrb[6].mxu0  ;;  %v295_v13 = vpop.f32.mrb[6].mxu1 }
 0x13a   :  { %476 = vst [vmem:[#allocation9 + $0x10] sm:$0xff] %v451_v10  ;;  %489 = vst [vmem:[#allocation9 + $0x78] sm:$0xff] %v464_v11  ;;  %v427_v14 = vadd.f32 %v937_v51, %v230_v12  ;;  %v602_v15 = vpop.f32.mrb[7].mxu0  ;;  %v440_v16 = vadd.f32 %v937_v51, %v295_v13  ;;  %v641_v17 = vpop.f32.mrb[7].mxu1 }
 0x13c   :  { %v452_v18 = vmax.f32 %v427_v14, 0.0  ;;  %v465_v19 = vmax.f32 %v440_v16, 0.0 }
 0x13d   :  { %v235_v20 = vpop.f32.mrb[8].mxu0  ;;  %v300_v21 = vpop.f32.mrb[8].mxu1 }
 0x13e   :  { %477 = vst [vmem:[#allocation9 + $0x18] sm:$0xff] %v452_v18  ;;  %490 = vst [vmem:[#allocation9 + $0x80] sm:$0xff] %v465_v19  ;;  %v428_v22 = vadd.f32 %v937_v51, %v235_v20  ;;  %v605_v23 = vpop.f32.mrb[9].mxu0  ;;  %v441_v24 = vadd.f32 %v937_v51, %v300_v21  ;;  %v644_v25 = vpop.f32.mrb[9].mxu1 }
 0x140   :  { %v453_v26 = vmax.f32 %v428_v22, 0.0  ;;  %v466_v27 = vmax.f32 %v441_v24, 0.0 }
 0x141   :  { %v240_v28 = vpop.f32.mrb[10].mxu0  ;;  %v305_v29 = vpop.f32.mrb[10].mxu1 }
 0x142   :  { %478 = vst [vmem:[#allocation9 + $0x20] sm:$0xff] %v453_v26  ;;  %491 = vst [vmem:[#allocation9 + $0x88] sm:$0xff] %v466_v27  ;;  %v429_v30 = vadd.f32 %v937_v51, %v240_v28  ;;  %v608_v31 = vpop.f32.mrb[11].mxu0  ;;  %v442_v32 = vadd.f32 %v937_v51, %v305_v29  ;;  %v647_v33 = vpop.f32.mrb[11].mxu1 }
 0x144   :  { %v454_v34 = vmax.f32 %v429_v30, 0.0  ;;  %v467_v35 = vmax.f32 %v442_v32, 0.0 }
 0x145   :  { %v245_v36 = vpop.f32.mrb[12].mxu0  ;;  %v310_v37 = vpop.f32.mrb[12].mxu1 }
 0x146   :  { %479 = vst [vmem:[#allocation9 + $0x28] sm:$0xff] %v454_v34  ;;  %492 = vst [vmem:[#allocation9 + $0x90] sm:$0xff] %v467_v35  ;;  %v430_v38 = vadd.f32 %v937_v51, %v245_v36  ;;  %v611_v39 = vpop.f32.mrb[13].mxu0  ;;  %v443_v40 = vadd.f32 %v937_v51, %v310_v37  ;;  %v650_v41 = vpop.f32.mrb[13].mxu1 }
 0x148   :  { %v455_v42 = vmax.f32 %v430_v38, 0.0  ;;  %v468_v43 = vmax.f32 %v443_v40, 0.0 }
 0x149   :  { %v250_v44 = vpop.f32.mrb[14].mxu0  ;;  %v315_v45 = vpop.f32.mrb[14].mxu1 }
 0x14a   :  { %480 = vst [vmem:[#allocation9 + $0x30] sm:$0xff] %v455_v42  ;;  %493 = vst [vmem:[#allocation9 + $0x98] sm:$0xff] %v468_v43  ;;  %v431_v46 = vadd.f32 %v937_v51, %v250_v44  ;;  %v614_v47 = vpop.f32.mrb[15].mxu0  ;;  %v444_v48 = vadd.f32 %v937_v51, %v315_v45  ;;  %v653_v49 = vpop.f32.mrb[15].mxu1 }
 0x14c   :  { %v456_v50 = vmax.f32 %v431_v46, 0.0  ;;  %v469_v52 = vmax.f32 %v444_v48, 0.0 }
 0x14d   :  { %v255_v53 = vpop.f32.mrb[16].mxu0  ;;  %v320_v54 = vpop.f32.mrb[16].mxu1 }
 0x14e   :  { %481 = vst [vmem:[#allocation9 + $0x38] sm:$0xff] %v456_v50  ;;  %494 = vst [vmem:[#allocation9 + $0xa0] sm:$0xff] %v469_v52  ;;  %v432_v55 = vadd.f32 %v937_v51, %v255_v53  ;;  %v617_v56 = vpop.f32.mrb[17].mxu0  ;;  %v445_v57 = vadd.f32 %v937_v51, %v320_v54  ;;  %v656_v58 = vpop.f32.mrb[17].mxu1 }
 0x150   :  { %v457_v59 = vmax.f32 %v432_v55, 0.0  ;;  %v470_v60 = vmax.f32 %v445_v57, 0.0 }
 0x151   :  { %v260_v61 = vpop.f32.mrb[18].mxu0  ;;  %v325_v62 = vpop.f32.mrb[18].mxu1 }
 0x152   :  { %482 = vst [vmem:[#allocation9 + $0x40] sm:$0xff] %v457_v59  ;;  %495 = vst [vmem:[#allocation9 + $0xa8] sm:$0xff] %v470_v60  ;;  %v433_v63 = vadd.f32 %v937_v51, %v260_v61  ;;  %v620_v0 = vpop.f32.mrb[19].mxu0  ;;  %v446_v1 = vadd.f32 %v937_v51, %v325_v62  ;;  %v659_v2 = vpop.f32.mrb[19].mxu1 }
 0x154   :  { %v458_v3 = vmax.f32 %v433_v63, 0.0  ;;  %v471_v4 = vmax.f32 %v446_v1, 0.0 }
 0x155   :  { %v265_v5 = vpop.f32.mrb[20].mxu0  ;;  %v330_v6 = vpop.f32.mrb[20].mxu1 }
 0x156   :  { %483 = vst [vmem:[#allocation9 + $0x48] sm:$0xff] %v458_v3  ;;  %496 = vst [vmem:[#allocation9 + $0xb0] sm:$0xff] %v471_v4  ;;  %v434_v7 = vadd.f32 %v937_v51, %v265_v5  ;;  %v623_v8 = vpop.f32.mrb[21].mxu0  ;;  %v447_v9 = vadd.f32 %v937_v51, %v330_v6  ;;  %v662_v10 = vpop.f32.mrb[21].mxu1 }
 0x158   :  { %v459_v11 = vmax.f32 %v434_v7, 0.0  ;;  %v472_v12 = vmax.f32 %v447_v9, 0.0 }
 0x159   :  { %v270_v13 = vpop.f32.mrb[22].mxu0  ;;  %v335_v14 = vpop.f32.mrb[22].mxu1 }
 0x15a   :  { %484 = vst [vmem:[#allocation9 + $0x50] sm:$0xff] %v459_v11  ;;  %497 = vst [vmem:[#allocation9 + $0xb8] sm:$0xff] %v472_v12  ;;  %v435_v15 = vadd.f32 %v937_v51, %v270_v13  ;;  %v626_v16 = vpop.f32.mrb[23].mxu0  ;;  %v448_v17 = vadd.f32 %v937_v51, %v335_v14  ;;  %v665_v18 = vpop.f32.mrb[23].mxu1 }
 0x15c   :  { %v460_v19 = vmax.f32 %v435_v15, 0.0  ;;  %v473_v20 = vmax.f32 %v448_v17, 0.0 }
 0x15d   :  { %v275_v21 = vpop.f32.mrb[24].mxu0 }
 0x15e   :  { %485 = vst [vmem:[#allocation9 + $0x58] sm:$0xff] %v460_v19  ;;  %498 = vst [vmem:[#allocation9 + $0xc0] sm:$0xff] %v473_v20  ;;  %v436_v22 = vadd.f32 %v937_v51, %v275_v21  ;;  %v629_v23 = vpop.f32.mrb[25].mxu0 }
 0x160   :  { %v461_v24 = vmax.f32 %v436_v22, 0.0 }
 0x162   :  { %486 = vst [vmem:[#allocation9 + $0x60] sm:$0xff] %v461_v24 }
 0x163   :  { %792 = shalt.err (!%p789_p0)
}
 0x164   :  { %s793_s28 = scalar_lea.hbm %s982_s3, 3200 }
 0x165   :  { %p794_p1 = scmp.ne.s32.totalorder %s982_s3, %s793_s28  ;;  %p797_p2 = scmp.lt.u32.totalorder %s793_s28, %s982_s3 }
 0x167   :  { %p799_p3 = pnand %p797_p2, %p794_p1 }
 0x169   :  { %802 = shalt.err (!%p799_p3)
}
 0x16a   :  { %510 = dma.vmem_to_hbm [thread:$0]  %s505_s22, 3200, %s982_s3, [#allocation5], %s811_s24, %s811_s24, %s812_s25  }
 0x16b   :  { %807 = dma.done.wait [#allocation5], 3200  }
 0x16c   :  { %808 = vsyncadd [#allocation5], 4294964096 }
 0x16d   :  { %514 = vsyncpa [#allocation4], 1 }
 0x16e   :  { %515 = vsyncpa [#allocation7], 1 }
 0x16f   :  { %516 = vsyncpa [#allocation5], 1 }

</bundles_post_ra>
